<compile_context>
chip_gen: v7x
topology: tpu7x:2x2x1
jax: 0.10.0
libtpu: 0.0.40
codegen_flags: <defaults>
</compile_context>

<pallas_src>
import jax
import jax.numpy as jnp
from jax.experimental import pallas as pl
from jax.experimental.pallas import tpu as pltpu

LANES = 128
_TARGET_BLOCK_BYTES = 4 * 1024 * 1024    # per-buffer block size (~roofline plateau)
_VMEM_LIMIT_BYTES = 32 * 1024 * 1024     # 3x in + 2x out blocks fit with headroom on all gens
_SMALL_INPUT_BYTES = 128 * 1024          # below this, plain jnp (fusable, no dispatch cost)


def _cdiv(a: int, b: int) -> int:
    return -(-a // b)


def _round_up(a: int, m: int) -> int:
    return _cdiv(a, m) * m


def _sublane_pack(itemsize: int) -> int:
    # native packed sublane count per vreg tile: f32 -> 8, bf16 -> 16, int8/fp8 -> 32
    return {4: 8, 2: 16, 1: 32}.get(itemsize, 8)


def _num_tensorcores() -> int:
    """Best-effort count of TensorCores per JAX device (megacore sharding target)."""
    try:
        kind = jax.devices()[0].device_kind.lower()
    except Exception:  # defensive: fall back to single-TC (= previous default) behavior
        return 1
    for tag in ("v4", "v5p", "v7", "7x"):
        if tag in kind:
            return 2
    return 1


def _pick_block_rows(rows: int, itemsize: int, num_tcs: int) -> int:
    """Row-block size: biggest sublane-aligned block <= ~4 MiB; even split on 2-TC chips."""
    subl = _sublane_pack(itemsize)
    target = max(subl, (_TARGET_BLOCK_BYTES // (LANES * itemsize)) // subl * subl)
    if num_tcs <= 1:
        # Single TensorCore: the grid is a serial loop, so never split just to
        # manufacture steps -- take the full extent or the largest aligned block.
        return rows if rows <= target else target
    # Dual TensorCore (megacore): br = round_up(cdiv(rows, 2k), subl) for the smallest
    # k with br <= target, so the ("parallel",) grid splits ~evenly across both cores
    # (avoids odd step counts / tiny remainder steps that leave one TC idle).
    if rows <= 2 * subl:
        return rows                        # too small to split usefully
    k = max(1, rows // (2 * target))
    while _round_up(_cdiv(rows, 2 * k), subl) > target:
        k += 1
    return _round_up(_cdiv(rows, 2 * k), subl)


def _h_swish_kernel(x_ref, o_ref):
    # Upcast to f32 for the math: free in a mem-bound kernel (VPU has huge slack)
    # and keeps bf16/fp8 inputs accurate; a no-op for f32 inputs.
    x = x_ref[...].astype(jnp.float32)
    # h_sigmoid(x) = relu6(x + 3) / 6 ; h_swish(x) = x * h_sigmoid(x).
    # Exact divide by 6 (not * (1/6)) to match the torch reference.
    # NOTE: in a partial (masked) last block the padding rows hold unspecified
    # values; they are computed but never stored.  Safe while this kernel stays
    # purely elementwise (no reductions over the block).
    o_ref[...] = (x * (jnp.clip(x + 3.0, 0.0, 6.0) / 6.0)).astype(o_ref.dtype)


def _h_swish_jnp(x: jax.Array) -> jax.Array:
    xf = x.astype(jnp.float32)
    return (xf * (jnp.clip(xf + 3.0, 0.0, 6.0) / 6.0)).astype(x.dtype)


def h_swish(x: jax.Array, *, force_pallas: bool = False, donate: bool = False) -> jax.Array:
    """Elementwise hard-swish matching torch's x * relu6(x+3)/6 for any shape.

    force_pallas: run the Pallas kernel even for tiny inputs (used for testing).
    donate:       alias the input HBM buffer to the output (caller must not reuse x
                  afterwards); saves a second full-size HBM allocation.
    """
    orig_shape = x.shape
    dtype = x.dtype
    n = x.size
    itemsize = jnp.dtype(dtype).itemsize

    # Tiny tensors: dispatch + one grid step dominates, and XLA can fuse the jnp
    # expression into neighbouring ops -> skip the kernel entirely.
    if n == 0 or (not force_pallas and n * itemsize < _SMALL_INPUT_BYTES):
        return _h_swish_jnp(x)

    flat = x.reshape(-1)                   # contiguous NCHW -> free reshape
    rows = n // LANES                      # 128-aligned prefix handled by Pallas
    n_main = rows * LANES
    if rows == 0:                          # <128 elements: nothing for the kernel to do
        return _h_swish_jnp(x)

    x2d = flat[:n_main].reshape(rows, LANES)
    br = _pick_block_rows(rows, itemsize, _num_tensorcores())
    grid = (pl.cdiv(rows, br),)            # partial last block is masked by Pallas

    idx_map = lambda i: (i, 0)
    in_spec = pl.BlockSpec((br, LANES), idx_map)
    if grid[0] >= 4:
        # DMA-bound kernel: 3-deep input buffering hides DMA issue latency
        # (+1 block of VMEM, still well inside the 32 MiB limit).
        try:
            in_spec = pl.BlockSpec((br, LANES), idx_map, pipeline_mode=pl.Buffered(3))
        except TypeError:
            pass  # TODO(synk): older Pallas without pipeline_mode; keep default 2-deep.

    call_kwargs = {}
    if donate:
        call_kwargs["input_output_aliases"] = {0: 0}

    out2d = pl.pallas_call(
        _h_swish_kernel,
        out_shape=jax.ShapeDtypeStruct((rows, LANES), dtype),
        grid_spec=pltpu.PrefetchScalarGridSpec(
            num_scalar_prefetch=0,
            grid=grid,
            in_specs=[in_spec],
            out_specs=pl.BlockSpec((br, LANES), idx_map),
        ),
        compiler_params=pltpu.CompilerParams(
            dimension_semantics=("parallel",),   # shards steps across v7x's two TCs
            vmem_limit_bytes=_VMEM_LIMIT_BYTES,
        ),
        **call_kwargs,
    )(x2d)

    out_flat = out2d.reshape(-1)
    if n_main != n:
        # Unaligned tail (<128 elems): plain jnp + one concatenate copy, instead of
        # the old pad+slice which re-read/re-wrote the whole tensor twice.
        out_flat = jnp.concatenate([out_flat, _h_swish_jnp(flat[n_main:])])
    return out_flat.reshape(orig_shape)


if __name__ == "__main__":
    root = jax.random.PRNGKey(0)
    k0, k1 = jax.random.split(root)

    # NCHW activation map consistent with the conv-net module (batch=2, ch=4, 16x16).
    x = jax.random.normal(k0, (2, 4, 16, 16), dtype=jnp.float32) * 4.0
    y = h_swish(x, force_pallas=True)      # force the Pallas path for this tiny demo
    jax.block_until_ready(y)

    ref = x * (jnp.clip(x + 3.0, 0.0, 6.0) / 6.0)
    assert y.shape == x.shape and y.dtype == x.dtype
    assert jnp.max(jnp.abs(y - ref)) < 1e-5

    # Also exercise the unaligned-tail path (n % 128 != 0).
    x2 = jax.random.normal(k1, (2, 3, 50), dtype=jnp.float32) * 4.0
    y2 = h_swish(x2, force_pallas=True)
    jax.block_until_ready(y2)
    ref2 = x2 * (jnp.clip(x2 + 3.0, 0.0, 6.0) / 6.0)
    assert y2.shape == x2.shape and jnp.max(jnp.abs(y2 - ref2)) < 1e-5

    print("KERNEL_OK")
</pallas_src>

<mosaic_0001>
module attributes {stable_mosaic.version = 11 : i64} {
  func.func @_h_swish_kernel(%arg0: i32, %arg1: memref<16x128xf32, #tpu.memory_space<vmem>>, %arg2: memref<16x128xf32, #tpu.memory_space<vmem>>) attributes {dimension_semantics = [#tpu.dimension_semantics<parallel>], iteration_bounds = array<i64: 1>, scalar_prefetch = 0 : i64, scratch_operands = 0 : i64, tpu.core_type = #tpu.core_type<tc>, window_params = [{transform_indices = @transform_0, window_bounds = array<i64: 16, 128>}, {transform_indices = @transform_1, window_bounds = array<i64: 16, 128>}]} {
    %c0 = arith.constant 0 : index
    %c0_0 = arith.constant 0 : index
    %0 = vector.load %arg1[%c0, %c0_0] : memref<16x128xf32, #tpu.memory_space<vmem>>, vector<16x128xf32>
    %cst = arith.constant 3.000000e+00 : f32
    %1 = vector.broadcast %cst : f32 to vector<16x128xf32>
    %2 = arith.addf %0, %1 : vector<16x128xf32>
    %cst_1 = arith.constant 0.000000e+00 : f32
    %cst_2 = arith.constant 6.000000e+00 : f32
    %3 = vector.broadcast %cst_1 : f32 to vector<16x128xf32>
    %4 = arith.maximumf %3, %2 : vector<16x128xf32>
    %5 = vector.broadcast %cst_2 : f32 to vector<16x128xf32>
    %6 = arith.minimumf %5, %4 : vector<16x128xf32>
    %cst_3 = arith.constant 6.000000e+00 : f32
    %7 = vector.broadcast %cst_3 : f32 to vector<16x128xf32>
    %8 = arith.divf %6, %7 : vector<16x128xf32>
    %9 = arith.mulf %0, %8 : vector<16x128xf32>
    %c0_4 = arith.constant 0 : index
    %c0_5 = arith.constant 0 : index
    %10 = vector.load %arg2[%c0_4, %c0_5] : memref<16x128xf32, #tpu.memory_space<vmem>>, vector<16x128xf32>
    tpu.vector_store %arg2[%c0_4, %c0_5], %9 {strides = array<i32>} : memref<16x128xf32, #tpu.memory_space<vmem>>, vector<16x128xf32>,
    return
  }
  func.func @transform_0(%arg0: i32) -> (i32, i32) {
    %c0_i32 = arith.constant 0 : i32
    %c0_i32_0 = arith.constant 0 : i32
    return %arg0, %c0_i32 : i32, i32
  }
  func.func @transform_1(%arg0: i32) -> (i32, i32) {
    %c0_i32 = arith.constant 0 : i32
    %c0_i32_0 = arith.constant 0 : i32
    return %arg0, %c0_i32 : i32, i32
  }
}

</mosaic_0001>

<bundles_post_ra>
// kernel: tpu_custom_call.1
= control target key start
LH: loop header
LB: loop body
LE: loop exit
PB: predicated region body
PF: predicated region fallthrough
CT: control target
= control target key end

     0   :  { %6 = vsyncpa [#allocation3], 0  ;;  %s151_s0 = inlined_call_operand.hbm [shape: f32[16,128], index: 0, kind: input, shape index: {}]   ;;  %s152_s1 = inlined_call_operand.hbm [shape: f32[16,128], index: 1, kind: output, shape index: {}]  }
   0x1   :  { %7 = vsyncpa [#allocation4], 0  ;;  %s107_s6 = smov [#allocation2]   ;;  %s59_s10 = scalar_lea.hbm %s151_s0, 256 }
   0x2   :  { %s13_s7 = sshll.u32 %s107_s6, 4  ;;  %p60_p0 = scmp.ne.s32.totalorder %s151_s0, %s59_s10  ;;  %s14_s7 = int_to_ptr.vmem [resolvable:$true] %s13_s7 }
   0x3   :  { %p63_p1 = scmp.lt.u32.totalorder %s59_s10, %s151_s0 }
   0x5   :  { %p65_p2 = pnand %p63_p1, %p60_p0 }
   0x7   :  { %68 = shalt.err (!%p65_p2)
}
   0x8   :  { %s69_s15 = scalar_lea.vmem %s14_s7, 256  ;;  %p74_p4 = scmp.lt.s32.totalorder %s14_s7, %s14_s7 }
   0x9   :  { %p70_p3 = scmp.ne.s32.totalorder %s14_s7, %s69_s15  ;;  %p75_p5 = scmp.lt.s32.totalorder %s69_s15, %s69_s15 }
   0xb   :  { %p76_p6 = por %p75_p5, %p74_p4 }
   0xd   :  { %p77_p7 = pnand %p76_p6, %p70_p3 }
   0xf   :  { %80 = shalt.err (!%p77_p7)
}
  0x10   :  { %s108_s16 = smov 128   ;;  %s109_s17 = smov 8  }
  0x11   :  { %19 = dma.hbm_to_vmem [thread:$0]  %s151_s0, 256, %s14_s7, [#allocation3], %s108_s16, %s108_s16, %s109_s17  }
  0x12   :  { %103 = dma.done.wait [#allocation3], 256  }
  0x13   :  { %104 = vsyncadd [#allocation3], 4294967040  ;;  %v23_v0 = vld [vmem:[#allocation2] sm:$0xff]  ;;  %v24_v1 = vld [vmem:[#allocation2 + $0x8] sm:$0xff]  ;;  %s110_s20 = smov [#allocation5]  }
  0x14   :  { %v25_v2 = vadd.f32 3.0, %v23_v0  ;;  %v26_v3 = vadd.f32 3.0, %v24_v1  ;;  %s43_s21 = sshll.u32 %s110_s20, 4  ;;  %s44_s21 = int_to_ptr.vmem [resolvable:$true] %s43_s21 }
  0x15   :  { %s81_s0 = scalar_lea.vmem %s44_s21, 256  ;;  %p86_p9 = scmp.lt.s32.totalorder %s44_s21, %s44_s21 }
  0x16   :  { %v27_v4 = vmax.f32 %v25_v2, 0.0  ;;  %v28_v5 = vmax.f32 %v26_v3, 0.0  ;;  %p82_p8 = scmp.ne.s32.totalorder %s44_s21, %s81_s0  ;;  %p87_p10 = scmp.lt.s32.totalorder %s81_s0, %s81_s0 }
  0x18   :  { %v29_v6 = vmin.f32 %v27_v4, 6.0  ;;  %v30_v7 = vmin.f32 %v28_v5, 6.0  ;;  %p88_p11 = por %p87_p10, %p86_p9 }
  0x1a   :  { %v32_v8 = vmul.f32 0.16666667, %v29_v6  ;;  %v33_v9 = vmul.f32 0.16666667, %v30_v7  ;;  %p89_p12 = pnand %p88_p11, %p82_p8 }
  0x1c   :  { %v34_v10 = vmul.f32 %v32_v8, %v23_v0  ;;  %v35_v11 = vmul.f32 %v33_v9, %v24_v1 }
  0x1e   :  { %36 = vst [vmem:[#allocation5] sm:$0xff] %v34_v10  ;;  %37 = vst [vmem:[#allocation5 + $0x8] sm:$0xff] %v35_v11 }
  0x1f   :  { %92 = shalt.err (!%p89_p12)
}
  0x20   :  { %s93_s24 = scalar_lea.hbm %s152_s1, 256 }
  0x21   :  { %p94_p13 = scmp.ne.s32.totalorder %s152_s1, %s93_s24  ;;  %p97_p0 = scmp.lt.u32.totalorder %s93_s24, %s152_s1 }
  0x23   :  { %p99_p1 = pnand %p97_p0, %p94_p13 }
  0x25   :  { %102 = shalt.err (!%p99_p1)
}
  0x26   :  { %49 = dma.vmem_to_hbm [thread:$0]  %s44_s21, 256, %s152_s1, [#allocation4], %s108_s16, %s108_s16, %s109_s17  }
  0x27   :  { %105 = dma.done.wait [#allocation4], 256  }
  0x28   :  { %106 = vsyncadd [#allocation4], 4294967040 }
  0x29   :  { %53 = vsyncpa [#allocation3], 1 }
  0x2a   :  { %54 = vsyncpa [#allocation4], 1 }

</bundles_post_ra>
